<compile_context>
chip_gen: v5e
topology: v5e:2x2
jax: 0.10.0
libtpu: 0.0.40
codegen_flags: <defaults>
</compile_context>

<pallas_src>
import jax
import jax.numpy as jnp
import numpy as np
from jax.experimental import pallas as pl
from jax.experimental.pallas import tpu as pltpu

LANES = 128
P_BITS = 32                 # bisection iterations (one per key bit)
_INT_MIN = -(2 ** 31)
_MASK31 = 0x7FFFFFFF


def _round_up(a, b):
    return ((a + b - 1) // b) * b


def _sum11(a):
    """Full reduce of a 2D tile to shape (1, 1)."""
    return jnp.sum(jnp.sum(a, axis=1, keepdims=True), axis=0, keepdims=True)


def _softplus(x):
    # log(1 + exp(x)) in the numerically-stable BCE-with-logits form.
    return jnp.maximum(x, 0.0) + jnp.log1p(jnp.exp(-jnp.abs(x)))


def _skey(x):
    """Monotonic int32 key of float32 x: x1 > x2  <=>  key1 > key2 (non-NaN)."""
    b = pltpu.bitcast(x, jnp.int32)
    return jnp.where(b < 0, b ^ jnp.int32(_MASK31), b)


def _make_ohnm_kernel(neg_ratio):
    def kernel(x_ref, t_ref, out_ref,
               pos_cnt, neg_cnt, pos_sum, keff, base, cnt, nsum):
        p = pl.program_id(0)                 # phase axis (outer, sequential)
        t = pl.program_id(1)                 # tile axis  (inner, sequential)
        last_t = pl.num_programs(1) - 1

        is_stats = p == 0
        is_bisect = (p >= 1) & (p <= P_BITS)
        is_final = p == P_BITS + 1

        x = x_ref[...]                       # (TR, 128) f32 logits
        tg = t_ref[...]                      # (TR, 128) f32 targets (pad = -1 -> ignored)
        neg_m = (tg == 0.0).astype(jnp.float32)

        # ------------------ phase 0: O(N) stats, computed exactly once ------------------
        @pl.when(is_stats & (t == 0))
        def _init_stats():
            pos_cnt[...] = jnp.zeros_like(pos_cnt)
            neg_cnt[...] = jnp.zeros_like(neg_cnt)
            pos_sum[...] = jnp.zeros_like(pos_sum)
            out_ref[...] = jnp.zeros_like(out_ref)

        @pl.when(is_stats)
        def _stats():
            pos_m = (tg > 0.0).astype(jnp.float32)
            pos_cnt[...] += _sum11(pos_m)          # f32 counts: exact for N < 2^24
            neg_cnt[...] += _sum11(neg_m)
            bce = _softplus(x) - x * tg            # BCE-with-logits (label = target)
            pos_sum[...] += _sum11(bce * pos_m)

        @pl.when(is_stats & (t == last_t))
        def _finish_stats():
            k = jnp.floor(pos_cnt[...] * neg_ratio)      # == int(pos_num * ratio)
            keff[...] = jnp.minimum(k, neg_cnt[...])     # topk needs k <= #negatives
            base[...] = jnp.full((1, 1), _INT_MIN, jnp.int32)

        # ---------- phases 1..32: MSB-first bisection for the k-th largest key ----------
        @pl.when(is_bisect & (t == 0))
        def _init_count():
            cnt[...] = jnp.zeros_like(cnt)

        @pl.when(is_bisect)
        def _count():
            bit = 32 - p                                       # 31 .. 0
            shift = jnp.int32(1) << jnp.minimum(bit, 30)       # safe for bit < 31
            cand = jnp.where(bit == 31,
                             jnp.zeros_like(base[...]),        # sign-bit test: T = 0
                             base[...] + shift)
            key = _skey(x)
            hit = neg_m * (key >= cand).astype(jnp.float32)
            cnt[...] += _sum11(hit)

        @pl.when(is_bisect & (t == last_t))
        def _update_base():
            bit = 32 - p
            shift = jnp.int32(1) << jnp.minimum(bit, 30)
            cand = jnp.where(bit == 31,
                             jnp.zeros_like(base[...]),
                             base[...] + shift)
            base[...] = jnp.where(cnt[...] >= keff[...], cand, base[...])

        # ------------------ phase 33: hard-negative sum + final loss --------------------
        @pl.when(is_final & (t == 0))
        def _init_final():
            cnt[...] = jnp.zeros_like(cnt)      # count of negatives strictly above tau
            nsum[...] = jnp.zeros_like(nsum)    # softplus sum of those

        @pl.when(is_final)
        def _final_acc():
            key = _skey(x)
            strict = neg_m * (key > base[...]).astype(jnp.float32)
            cnt[...] += _sum11(strict)
            nsum[...] += _sum11(_softplus(x) * strict)

        @pl.when(is_final & (t == last_t))
        def _finish():
            tau_key = base[...]
            tau_bits = jnp.where(tau_key >= 0, tau_key, tau_key ^ jnp.int32(_MASK31))
            tau = pltpu.bitcast(tau_bits, jnp.float32)   # k-th largest negative logit
            kv = keff[...]
            # top-k = all strictly-above-tau negatives + (k - strict_cnt) ties at tau;
            # ties share the logit value, so the sum matches topk exactly.
            neg_contrib = jnp.where(kv > 0.0,
                                    nsum[...] + (kv - cnt[...]) * _softplus(tau),
                                    jnp.zeros_like(kv))
            denom = pos_cnt[...] + kv
            total = pos_sum[...] + neg_contrib
            # pos_num == 0 -> return 0.0 (PyTorch would give NaN on an empty mean).
            out_ref[...] = jnp.where(denom > 0.0, total / denom, jnp.zeros_like(total))

    return kernel


def ohnm_loss(logits, targets, neg_ratio=3.0, max_block_rows=256):
    """OHNM BCE-with-logits loss; mirrors OHNMLoss.forward (NCHW or any shape)."""
    x = jnp.asarray(logits, jnp.float32).reshape(-1)
    tg = jnp.asarray(targets, jnp.float32).reshape(-1)
    n = x.shape[0]

    rows = max(1, pl.cdiv(n, LANES))
    mbr = _round_up(max(int(max_block_rows), 8), 8)
    block_rows = min(mbr, _round_up(rows, 8))
    rows_pad = _round_up(rows, block_rows)
    n_pad = rows_pad * LANES

    # Pad logits with 0 and targets with -1 (ignored: neither positive nor negative).
    x = jnp.pad(x, (0, n_pad - n))
    tg = jnp.pad(tg, (0, n_pad - n), constant_values=-1.0)
    x2 = x.reshape(rows_pad, LANES)
    t2 = tg.reshape(rows_pad, LANES)
    num_tiles = rows_pad // block_rows

    out = pl.pallas_call(
        _make_ohnm_kernel(float(neg_ratio)),
        out_shape=jax.ShapeDtypeStruct((1, 1), jnp.float32),
        grid=(P_BITS + 2, num_tiles),
        in_specs=[
            pl.BlockSpec((block_rows, LANES), lambda p, ti: (ti, 0)),
            pl.BlockSpec((block_rows, LANES), lambda p, ti: (ti, 0)),
        ],
        out_specs=pl.BlockSpec((1, 1), lambda p, ti: (0, 0)),
        scratch_shapes=[
            pltpu.VMEM((1, 1), jnp.float32),   # pos_cnt
            pltpu.VMEM((1, 1), jnp.float32),   # neg_cnt
            pltpu.VMEM((1, 1), jnp.float32),   # pos_sum
            pltpu.VMEM((1, 1), jnp.float32),   # keff = min(int(pos*ratio), #neg)
            pltpu.VMEM((1, 1), jnp.int32),     # base (bisection prefix / threshold key)
            pltpu.VMEM((1, 1), jnp.float32),   # cnt  (per-phase count accumulator)
            pltpu.VMEM((1, 1), jnp.float32),   # nsum (hard-negative softplus sum)
        ],
        compiler_params=pltpu.CompilerParams(
            dimension_semantics=("arbitrary", "arbitrary")),
    )(x2, t2)
    return out[0, 0]


def ohnm_loss_ref(logits, targets, neg_ratio=3.0):
    """NumPy reference reproducing the PyTorch forward."""
    x = np.asarray(logits, np.float32).reshape(-1)
    t = np.asarray(targets, np.float32).reshape(-1)
    pos_logits = x[t > 0]
    pos_labels = t[t > 0]
    neg_logits = x[t == 0]
    pos_num = pos_logits.size
    neg_num = int(pos_num * neg_ratio)
    neg_top = np.sort(neg_logits)[::-1][:neg_num]
    all_x = np.concatenate([pos_logits, neg_top])
    all_y = np.concatenate([pos_labels, np.zeros(neg_top.size, np.float32)])
    if all_x.size == 0:
        return 0.0
    bce = np.maximum(all_x, 0.0) - all_x * all_y + np.log1p(np.exp(-np.abs(all_x)))
    return float(bce.mean())


if __name__ == "__main__":
    key = jax.random.PRNGKey(0)
    k1, k2, k3, k4 = jax.random.split(key, 4)

    # Case 1: SiamFC-style NCHW score map, single row-tile.
    B, C, H, W = 2, 1, 16, 16
    logits = jax.random.normal(k1, (B, C, H, W), dtype=jnp.float32)
    u = jax.random.uniform(k2, (B, C, H, W))
    # ~10% positives (1), ~80% negatives (0), ~10% ignored (-1)
    targets = jnp.where(u < 0.10, 1.0, jnp.where(u < 0.90, 0.0, -1.0)).astype(jnp.float32)
    loss = jax.block_until_ready(ohnm_loss(logits, targets))
    ref = ohnm_loss_ref(np.asarray(logits), np.asarray(targets))
    assert np.allclose(float(loss), ref, rtol=1e-5, atol=1e-5), (float(loss), ref)

    # Case 2: multi-tile path (small block_rows forces >1 tile along the row axis).
    B2, C2, H2, W2 = 2, 1, 32, 32
    logits2 = jax.random.normal(k3, (B2, C2, H2, W2), dtype=jnp.float32)
    u2 = jax.random.uniform(k4, (B2, C2, H2, W2))
    targets2 = jnp.where(u2 < 0.10, 1.0, jnp.where(u2 < 0.90, 0.0, -1.0)).astype(jnp.float32)
    loss2 = jax.block_until_ready(ohnm_loss(logits2, targets2, max_block_rows=8))
    ref2 = ohnm_loss_ref(np.asarray(logits2), np.asarray(targets2))
    assert np.allclose(float(loss2), ref2, rtol=1e-5, atol=1e-5), (float(loss2), ref2)

    print("KERNEL_OK")
</pallas_src>

<mosaic_0001>
module attributes {stable_mosaic.version = 11 : i64} {
  func.func @kernel(%arg0: i32, %arg1: i32, %arg2: memref<8x128xf32, #tpu.memory_space<vmem>>, %arg3: memref<8x128xf32, #tpu.memory_space<vmem>>, %arg4: memref<1x1xf32, #tpu.memory_space<vmem>>, %arg5: memref<1x1xf32, #tpu.memory_space<vmem>>, %arg6: memref<1x1xf32, #tpu.memory_space<vmem>>, %arg7: memref<1x1xf32, #tpu.memory_space<vmem>>, %arg8: memref<1x1xf32, #tpu.memory_space<vmem>>, %arg9: memref<1x1xi32, #tpu.memory_space<vmem>>, %arg10: memref<1x1xf32, #tpu.memory_space<vmem>>, %arg11: memref<1x1xf32, #tpu.memory_space<vmem>>) attributes {dimension_semantics = [#tpu.dimension_semantics<arbitrary>, #tpu.dimension_semantics<arbitrary>], iteration_bounds = array<i64: 34, 1>, scalar_prefetch = 0 : i64, scratch_operands = 7 : i64, tpu.core_type = #tpu.core_type<tc>, window_params = [{transform_indices = @transform_0, window_bounds = array<i64: 8, 128>}, {transform_indices = @transform_1, window_bounds = array<i64: 8, 128>}, {pipeline_mode = #tpu.pipeline_mode<synchronous>, transform_indices = @transform_2, window_bounds = array<i64: 1, 1>}]} {
    %c0_i32 = arith.constant 0 : i32
    %0 = arith.cmpi eq, %arg0, %c0_i32 : i32
    %c1_i32 = arith.constant 1 : i32
    %1 = arith.cmpi sge, %arg0, %c1_i32 : i32
    %c32_i32 = arith.constant 32 : i32
    %2 = arith.cmpi sle, %arg0, %c32_i32 : i32
    %3 = arith.andi %1, %2 : i1
    %c33_i32 = arith.constant 33 : i32
    %4 = arith.cmpi eq, %arg0, %c33_i32 : i32
    %c0 = arith.constant 0 : index
    %c0_0 = arith.constant 0 : index
    %5 = vector.load %arg2[%c0, %c0_0] : memref<8x128xf32, #tpu.memory_space<vmem>>, vector<8x128xf32>
    %c0_1 = arith.constant 0 : index
    %c0_2 = arith.constant 0 : index
    %6 = vector.load %arg3[%c0_1, %c0_2] : memref<8x128xf32, #tpu.memory_space<vmem>>, vector<8x128xf32>
    %cst = arith.constant 0.000000e+00 : f32
    %7 = vector.broadcast %cst : f32 to vector<8x128xf32>
    %8 = arith.cmpf oeq, %6, %7 : vector<8x128xf32>
    %9 = arith.extui %8 : vector<8x128xi1> to vector<8x128xi32>
    %10 = arith.sitofp %9 : vector<8x128xi32> to vector<8x128xf32>
    %c0_i32_3 = arith.constant 0 : i32
    %11 = arith.cmpi eq, %arg1, %c0_i32_3 : i32
    %12 = arith.andi %0, %11 : i1
    %13 = arith.extui %12 : i1 to i32
    %c0_i32_4 = arith.constant 0 : i32
    %14 = arith.cmpi ne, %13, %c0_i32_4 : i32
    scf.if %14 {
      %cst_18 = arith.constant 0.000000e+00 : f32
      %41 = vector.broadcast %cst_18 : f32 to vector<1x1xf32>
      %c0_19 = arith.constant 0 : index
      %c0_20 = arith.constant 0 : index
      %42 = vector.load %arg5[%c0_19, %c0_20] : memref<1x1xf32, #tpu.memory_space<vmem>>, vector<1x1xf32>
      tpu.vector_store %arg5[%c0_19, %c0_20], %41 {strides = array<i32>} : memref<1x1xf32, #tpu.memory_space<vmem>>, vector<1x1xf32>,
      %cst_21 = arith.constant 0.000000e+00 : f32
      %43 = vector.broadcast %cst_21 : f32 to vector<1x1xf32>
      %c0_22 = arith.constant 0 : index
      %c0_23 = arith.constant 0 : index
      %44 = vector.load %arg6[%c0_22, %c0_23] : memref<1x1xf32, #tpu.memory_space<vmem>>, vector<1x1xf32>
      tpu.vector_store %arg6[%c0_22, %c0_23], %43 {strides = array<i32>} : memref<1x1xf32, #tpu.memory_space<vmem>>, vector<1x1xf32>,
      %cst_24 = arith.constant 0.000000e+00 : f32
      %45 = vector.broadcast %cst_24 : f32 to vector<1x1xf32>
      %c0_25 = arith.constant 0 : index
      %c0_26 = arith.constant 0 : index
      %46 = vector.load %arg7[%c0_25, %c0_26] : memref<1x1xf32, #tpu.memory_space<vmem>>, vector<1x1xf32>
      tpu.vector_store %arg7[%c0_25, %c0_26], %45 {strides = array<i32>} : memref<1x1xf32, #tpu.memory_space<vmem>>, vector<1x1xf32>,
      %cst_27 = arith.constant 0.000000e+00 : f32
      %47 = vector.broadcast %cst_27 : f32 to vector<1x1xf32>
      %c0_28 = arith.constant 0 : index
      %c0_29 = arith.constant 0 : index
      %48 = vector.load %arg4[%c0_28, %c0_29] : memref<1x1xf32, #tpu.memory_space<vmem>>, vector<1x1xf32>
      tpu.vector_store %arg4[%c0_28, %c0_29], %47 {strides = array<i32>} : memref<1x1xf32, #tpu.memory_space<vmem>>, vector<1x1xf32>,
    } else {
    }
    %15 = arith.extui %0 : i1 to i32
    %c0_i32_5 = arith.constant 0 : i32
    %16 = arith.cmpi ne, %15, %c0_i32_5 : i32
    scf.if %16 {
      %cst_18 = arith.constant 0.000000e+00 : f32
      %41 = vector.broadcast %cst_18 : f32 to vector<8x128xf32>
      %42 = arith.cmpf ogt, %6, %41 : vector<8x128xf32>
      %43 = arith.extui %42 : vector<8x128xi1> to vector<8x128xi32>
      %44 = arith.sitofp %43 : vector<8x128xi32> to vector<8x128xf32>
      %c0_19 = arith.constant 0 : index
      %c0_20 = arith.constant 0 : index
      %45 = vector.load %arg5[%c0_19, %c0_20] : memref<1x1xf32, #tpu.memory_space<vmem>>, vector<1x1xf32>
      %cst_21 = arith.constant dense<0.000000e+00> : vector<8xf32>
      %46 = vector.multi_reduction <add>, %44, %cst_21 [1] : vector<8x128xf32> to vector<8xf32>
      %47 = vector.shape_cast %46 : vector<8xf32> to vector<8x1xf32>
      %cst_22 = arith.constant dense<0.000000e+00> : vector<1xf32>
      %48 = vector.multi_reduction <add>, %47, %cst_22 [0] : vector<8x1xf32> to vector<1xf32>
      %49 = vector.shape_cast %48 : vector<1xf32> to vector<1x1xf32>
      %50 = arith.addf %45, %49 : vector<1x1xf32>
      %c0_23 = arith.constant 0 : index
      %c0_24 = arith.constant 0 : index
      %51 = vector.load %arg5[%c0_23, %c0_24] : memref<1x1xf32, #tpu.memory_space<vmem>>, vector<1x1xf32>
      tpu.vector_store %arg5[%c0_23, %c0_24], %50 {strides = array<i32>} : memref<1x1xf32, #tpu.memory_space<vmem>>, vector<1x1xf32>,
      %c0_25 = arith.constant 0 : index
      %c0_26 = arith.constant 0 : index
      %52 = vector.load %arg6[%c0_25, %c0_26] : memref<1x1xf32, #tpu.memory_space<vmem>>, vector<1x1xf32>
      %cst_27 = arith.constant dense<0.000000e+00> : vector<8xf32>
      %53 = vector.multi_reduction <add>, %10, %cst_27 [1] : vector<8x128xf32> to vector<8xf32>
      %54 = vector.shape_cast %53 : vector<8xf32> to vector<8x1xf32>
      %cst_28 = arith.constant dense<0.000000e+00> : vector<1xf32>
      %55 = vector.multi_reduction <add>, %54, %cst_28 [0] : vector<8x1xf32> to vector<1xf32>
      %56 = vector.shape_cast %55 : vector<1xf32> to vector<1x1xf32>
      %57 = arith.addf %52, %56 : vector<1x1xf32>
      %c0_29 = arith.constant 0 : index
      %c0_30 = arith.constant 0 : index
      %58 = vector.load %arg6[%c0_29, %c0_30] : memref<1x1xf32, #tpu.memory_space<vmem>>, vector<1x1xf32>
      tpu.vector_store %arg6[%c0_29, %c0_30], %57 {strides = array<i32>} : memref<1x1xf32, #tpu.memory_space<vmem>>, vector<1x1xf32>,
      %cst_31 = arith.constant 0.000000e+00 : f32
      %59 = vector.broadcast %cst_31 : f32 to vector<8x128xf32>
      %60 = arith.maximumf %5, %59 : vector<8x128xf32>
      %61 = math.absf %5 : vector<8x128xf32>
      %cst_32 = arith.constant 0.000000e+00 : f32
      %62 = vector.broadcast %cst_32 : f32 to vector<8x128xf32>
      %63 = arith.subf %62, %61 : vector<8x128xf32>
      %64 = math.exp %63 : vector<8x128xf32>
      %65 = math.log1p %64 : vector<8x128xf32>
      %66 = arith.addf %60, %65 : vector<8x128xf32>
      %67 = arith.mulf %5, %6 : vector<8x128xf32>
      %68 = arith.subf %66, %67 : vector<8x128xf32>
      %c0_33 = arith.constant 0 : index
      %c0_34 = arith.constant 0 : index
      %69 = vector.load %arg7[%c0_33, %c0_34] : memref<1x1xf32, #tpu.memory_space<vmem>>, vector<1x1xf32>
      %70 = arith.mulf %68, %44 : vector<8x128xf32>
      %cst_35 = arith.constant dense<0.000000e+00> : vector<8xf32>
      %71 = vector.multi_reduction <add>, %70, %cst_35 [1] : vector<8x128xf32> to vector<8xf32>
      %72 = vector.shape_cast %71 : vector<8xf32> to vector<8x1xf32>
      %cst_36 = arith.constant dense<0.000000e+00> : vector<1xf32>
      %73 = vector.multi_reduction <add>, %72, %cst_36 [0] : vector<8x1xf32> to vector<1xf32>
      %74 = vector.shape_cast %73 : vector<1xf32> to vector<1x1xf32>
      %75 = arith.addf %69, %74 : vector<1x1xf32>
      %c0_37 = arith.constant 0 : index
      %c0_38 = arith.constant 0 : index
      %76 = vector.load %arg7[%c0_37, %c0_38] : memref<1x1xf32, #tpu.memory_space<vmem>>, vector<1x1xf32>
      tpu.vector_store %arg7[%c0_37, %c0_38], %75 {strides = array<i32>} : memref<1x1xf32, #tpu.memory_space<vmem>>, vector<1x1xf32>,
    } else {
    }
    %c0_i32_6 = arith.constant 0 : i32
    %17 = arith.cmpi eq, %arg1, %c0_i32_6 : i32
    %18 = arith.andi %0, %17 : i1
    %19 = arith.extui %18 : i1 to i32
    %c0_i32_7 = arith.constant 0 : i32
    %20 = arith.cmpi ne, %19, %c0_i32_7 : i32
    scf.if %20 {
      %c0_18 = arith.constant 0 : index
      %c0_19 = arith.constant 0 : index
      %41 = vector.load %arg5[%c0_18, %c0_19] : memref<1x1xf32, #tpu.memory_space<vmem>>, vector<1x1xf32>
      %cst_20 = arith.constant 3.000000e+00 : f32
      %42 = vector.broadcast %cst_20 : f32 to vector<1x1xf32>
      %43 = arith.mulf %41, %42 : vector<1x1xf32>
      %44 = math.floor %43 : vector<1x1xf32>
      %c0_21 = arith.constant 0 : index
      %c0_22 = arith.constant 0 : index
      %45 = vector.load %arg6[%c0_21, %c0_22] : memref<1x1xf32, #tpu.memory_space<vmem>>, vector<1x1xf32>
      %46 = arith.minimumf %44, %45 : vector<1x1xf32>
      %c0_23 = arith.constant 0 : index
      %c0_24 = arith.constant 0 : index
      %47 = vector.load %arg8[%c0_23, %c0_24] : memref<1x1xf32, #tpu.memory_space<vmem>>, vector<1x1xf32>
      tpu.vector_store %arg8[%c0_23, %c0_24], %46 {strides = array<i32>} : memref<1x1xf32, #tpu.memory_space<vmem>>, vector<1x1xf32>,
      %c-2147483648_i32 = arith.constant -2147483648 : i32
      %48 = vector.broadcast %c-2147483648_i32 : i32 to vector<1x1xi32>
      %c0_25 = arith.constant 0 : index
      %c0_26 = arith.constant 0 : index
      %49 = vector.load %arg9[%c0_25, %c0_26] : memref<1x1xi32, #tpu.memory_space<vmem>>, vector<1x1xi32>
      tpu.vector_store %arg9[%c0_25, %c0_26], %48 {strides = array<i32>} : memref<1x1xi32, #tpu.memory_space<vmem>>, vector<1x1xi32>,
    } else {
    }
    %c0_i32_8 = arith.constant 0 : i32
    %21 = arith.cmpi eq, %arg1, %c0_i32_8 : i32
    %22 = arith.andi %3, %21 : i1
    %23 = arith.extui %22 : i1 to i32
    %c0_i32_9 = arith.constant 0 : i32
    %24 = arith.cmpi ne, %23, %c0_i32_9 : i32
    scf.if %24 {
      %cst_18 = arith.constant 0.000000e+00 : f32
      %41 = vector.broadcast %cst_18 : f32 to vector<1x1xf32>
      %c0_19 = arith.constant 0 : index
      %c0_20 = arith.constant 0 : index
      %42 = vector.load %arg10[%c0_19, %c0_20] : memref<1x1xf32, #tpu.memory_space<vmem>>, vector<1x1xf32>
      tpu.vector_store %arg10[%c0_19, %c0_20], %41 {strides = array<i32>} : memref<1x1xf32, #tpu.memory_space<vmem>>, vector<1x1xf32>,
    } else {
    }
    %25 = arith.extui %3 : i1 to i32
    %c0_i32_10 = arith.constant 0 : i32
    %26 = arith.cmpi ne, %25, %c0_i32_10 : i32
    scf.if %26 {
      %c32_i32_18 = arith.constant 32 : i32
      %41 = arith.subi %c32_i32_18, %arg0 : i32
      %c30_i32 = arith.constant 30 : i32
      %42 = arith.minsi %41, %c30_i32 : i32
      %c1_i32_19 = arith.constant 1 : i32
      %43 = arith.shli %c1_i32_19, %42 : i32
      %c31_i32 = arith.constant 31 : i32
      %44 = arith.cmpi eq, %41, %c31_i32 : i32
      %c0_i32_20 = arith.constant 0 : i32
      %45 = vector.broadcast %c0_i32_20 : i32 to vector<1x1xi32>
      %c0_21 = arith.constant 0 : index
      %c0_22 = arith.constant 0 : index
      %46 = vector.load %arg9[%c0_21, %c0_22] : memref<1x1xi32, #tpu.memory_space<vmem>>, vector<1x1xi32>
      %47 = vector.broadcast %43 : i32 to vector<1x1xi32>
      %48 = arith.addi %46, %47 : vector<1x1xi32>
      %49 = arith.select %44, %45, %48 : vector<1x1xi32>
      %50 = tpu.bitcast %5 : vector<8x128xf32> -> vector<8x128xi32>
      %c0_i32_23 = arith.constant 0 : i32
      %51 = vector.broadcast %c0_i32_23 : i32 to vector<8x128xi32>
      %52 = arith.cmpi slt, %50, %51 : vector<8x128xi32>
      %c2147483647_i32 = arith.constant 2147483647 : i32
      %53 = vector.broadcast %c2147483647_i32 : i32 to vector<8x128xi32>
      %54 = arith.xori %50, %53 : vector<8x128xi32>
      %55 = arith.select %52, %54, %50 : vector<8x128xi1>, vector<8x128xi32>
      %56 = vector.broadcast %49 : vector<1x1xi32> to vector<8x128xi32>
      %57 = arith.cmpi sge, %55, %56 : vector<8x128xi32>
      %58 = arith.extui %57 : vector<8x128xi1> to vector<8x128xi32>
      %59 = arith.sitofp %58 : vector<8x128xi32> to vector<8x128xf32>
      %60 = arith.mulf %10, %59 : vector<8x128xf32>
      %c0_24 = arith.constant 0 : index
      %c0_25 = arith.constant 0 : index
      %61 = vector.load %arg10[%c0_24, %c0_25] : memref<1x1xf32, #tpu.memory_space<vmem>>, vector<1x1xf32>
      %cst_26 = arith.constant dense<0.000000e+00> : vector<8xf32>
      %62 = vector.multi_reduction <add>, %60, %cst_26 [1] : vector<8x128xf32> to vector<8xf32>
      %63 = vector.shape_cast %62 : vector<8xf32> to vector<8x1xf32>
      %cst_27 = arith.constant dense<0.000000e+00> : vector<1xf32>
      %64 = vector.multi_reduction <add>, %63, %cst_27 [0] : vector<8x1xf32> to vector<1xf32>
      %65 = vector.shape_cast %64 : vector<1xf32> to vector<1x1xf32>
      %66 = arith.addf %61, %65 : vector<1x1xf32>
      %c0_28 = arith.constant 0 : index
      %c0_29 = arith.constant 0 : index
      %67 = vector.load %arg10[%c0_28, %c0_29] : memref<1x1xf32, #tpu.memory_space<vmem>>, vector<1x1xf32>
      tpu.vector_store %arg10[%c0_28, %c0_29], %66 {strides = array<i32>} : memref<1x1xf32, #tpu.memory_space<vmem>>, vector<1x1xf32>,
    } else {
    }
    %c0_i32_11 = arith.constant 0 : i32
    %27 = arith.cmpi eq, %arg1, %c0_i32_11 : i32
    %28 = arith.andi %3, %27 : i1
    %29 = arith.extui %28 : i1 to i32
    %c0_i32_12 = arith.constant 0 : i32
    %30 = arith.cmpi ne, %29, %c0_i32_12 : i32
    scf.if %30 {
      %c32_i32_18 = arith.constant 32 : i32
      %41 = arith.subi %c32_i32_18, %arg0 : i32
      %c30_i32 = arith.constant 30 : i32
      %42 = arith.minsi %41, %c30_i32 : i32
      %c1_i32_19 = arith.constant 1 : i32
      %43 = arith.shli %c1_i32_19, %42 : i32
      %c31_i32 = arith.constant 31 : i32
      %44 = arith.cmpi eq, %41, %c31_i32 : i32
      %c0_i32_20 = arith.constant 0 : i32
      %45 = vector.broadcast %c0_i32_20 : i32 to vector<1x1xi32>
      %c0_21 = arith.constant 0 : index
      %c0_22 = arith.constant 0 : index
      %46 = vector.load %arg9[%c0_21, %c0_22] : memref<1x1xi32, #tpu.memory_space<vmem>>, vector<1x1xi32>
      %47 = vector.broadcast %43 : i32 to vector<1x1xi32>
      %48 = arith.addi %46, %47 : vector<1x1xi32>
      %49 = arith.select %44, %45, %48 : vector<1x1xi32>
      %c0_23 = arith.constant 0 : index
      %c0_24 = arith.constant 0 : index
      %50 = vector.load %arg10[%c0_23, %c0_24] : memref<1x1xf32, #tpu.memory_space<vmem>>, vector<1x1xf32>
      %c0_25 = arith.constant 0 : index
      %c0_26 = arith.constant 0 : index
      %51 = vector.load %arg8[%c0_25, %c0_26] : memref<1x1xf32, #tpu.memory_space<vmem>>, vector<1x1xf32>
      %52 = arith.cmpf oge, %50, %51 : vector<1x1xf32>
      %c0_27 = arith.constant 0 : index
      %c0_28 = arith.constant 0 : index
      %53 = vector.load %arg9[%c0_27, %c0_28] : memref<1x1xi32, #tpu.memory_space<vmem>>, vector<1x1xi32>
      %54 = arith.select %52, %49, %53 : vector<1x1xi1>, vector<1x1xi32>
      %c0_29 = arith.constant 0 : index
      %c0_30 = arith.constant 0 : index
      %55 = vector.load %arg9[%c0_29, %c0_30] : memref<1x1xi32, #tpu.memory_space<vmem>>, vector<1x1xi32>
      tpu.vector_store %arg9[%c0_29, %c0_30], %54 {strides = array<i32>} : memref<1x1xi32, #tpu.memory_space<vmem>>, vector<1x1xi32>,
    } else {
    }
    %c0_i32_13 = arith.constant 0 : i32
    %31 = arith.cmpi eq, %arg1, %c0_i32_13 : i32
    %32 = arith.andi %4, %31 : i1
    %33 = arith.extui %32 : i1 to i32
    %c0_i32_14 = arith.constant 0 : i32
    %34 = arith.cmpi ne, %33, %c0_i32_14 : i32
    scf.if %34 {
      %cst_18 = arith.constant 0.000000e+00 : f32
      %41 = vector.broadcast %cst_18 : f32 to vector<1x1xf32>
      %c0_19 = arith.constant 0 : index
      %c0_20 = arith.constant 0 : index
      %42 = vector.load %arg10[%c0_19, %c0_20] : memref<1x1xf32, #tpu.memory_space<vmem>>, vector<1x1xf32>
      tpu.vector_store %arg10[%c0_19, %c0_20], %41 {strides = array<i32>} : memref<1x1xf32, #tpu.memory_space<vmem>>, vector<1x1xf32>,
      %cst_21 = arith.constant 0.000000e+00 : f32
      %43 = vector.broadcast %cst_21 : f32 to vector<1x1xf32>
      %c0_22 = arith.constant 0 : index
      %c0_23 = arith.constant 0 : index
      %44 = vector.load %arg11[%c0_22, %c0_23] : memref<1x1xf32, #tpu.memory_space<vmem>>, vector<1x1xf32>
      tpu.vector_store %arg11[%c0_22, %c0_23], %43 {strides = array<i32>} : memref<1x1xf32, #tpu.memory_space<vmem>>, vector<1x1xf32>,
    } else {
    }
    %35 = arith.extui %4 : i1 to i32
    %c0_i32_15 = arith.constant 0 : i32
    %36 = arith.cmpi ne, %35, %c0_i32_15 : i32
    scf.if %36 {
      %41 = tpu.bitcast %5 : vector<8x128xf32> -> vector<8x128xi32>
      %c0_i32_18 = arith.constant 0 : i32
      %42 = vector.broadcast %c0_i32_18 : i32 to vector<8x128xi32>
      %43 = arith.cmpi slt, %41, %42 : vector<8x128xi32>
      %c2147483647_i32 = arith.constant 2147483647 : i32
      %44 = vector.broadcast %c2147483647_i32 : i32 to vector<8x128xi32>
      %45 = arith.xori %41, %44 : vector<8x128xi32>
      %46 = arith.select %43, %45, %41 : vector<8x128xi1>, vector<8x128xi32>
      %c0_19 = arith.constant 0 : index
      %c0_20 = arith.constant 0 : index
      %47 = vector.load %arg9[%c0_19, %c0_20] : memref<1x1xi32, #tpu.memory_space<vmem>>, vector<1x1xi32>
      %48 = vector.broadcast %47 : vector<1x1xi32> to vector<8x128xi32>
      %49 = arith.cmpi sgt, %46, %48 : vector<8x128xi32>
      %50 = arith.extui %49 : vector<8x128xi1> to vector<8x128xi32>
      %51 = arith.sitofp %50 : vector<8x128xi32> to vector<8x128xf32>
      %52 = arith.mulf %10, %51 : vector<8x128xf32>
      %c0_21 = arith.constant 0 : index
      %c0_22 = arith.constant 0 : index
      %53 = vector.load %arg10[%c0_21, %c0_22] : memref<1x1xf32, #tpu.memory_space<vmem>>, vector<1x1xf32>
      %cst_23 = arith.constant dense<0.000000e+00> : vector<8xf32>
      %54 = vector.multi_reduction <add>, %52, %cst_23 [1] : vector<8x128xf32> to vector<8xf32>
      %55 = vector.shape_cast %54 : vector<8xf32> to vector<8x1xf32>
      %cst_24 = arith.constant dense<0.000000e+00> : vector<1xf32>
      %56 = vector.multi_reduction <add>, %55, %cst_24 [0] : vector<8x1xf32> to vector<1xf32>
      %57 = vector.shape_cast %56 : vector<1xf32> to vector<1x1xf32>
      %58 = arith.addf %53, %57 : vector<1x1xf32>
      %c0_25 = arith.constant 0 : index
      %c0_26 = arith.constant 0 : index
      %59 = vector.load %arg10[%c0_25, %c0_26] : memref<1x1xf32, #tpu.memory_space<vmem>>, vector<1x1xf32>
      tpu.vector_store %arg10[%c0_25, %c0_26], %58 {strides = array<i32>} : memref<1x1xf32, #tpu.memory_space<vmem>>, vector<1x1xf32>,
      %c0_27 = arith.constant 0 : index
      %c0_28 = arith.constant 0 : index
      %60 = vector.load %arg11[%c0_27, %c0_28] : memref<1x1xf32, #tpu.memory_space<vmem>>, vector<1x1xf32>
      %cst_29 = arith.constant 0.000000e+00 : f32
      %61 = vector.broadcast %cst_29 : f32 to vector<8x128xf32>
      %62 = arith.maximumf %5, %61 : vector<8x128xf32>
      %63 = math.absf %5 : vector<8x128xf32>
      %cst_30 = arith.constant 0.000000e+00 : f32
      %64 = vector.broadcast %cst_30 : f32 to vector<8x128xf32>
      %65 = arith.subf %64, %63 : vector<8x128xf32>
      %66 = math.exp %65 : vector<8x128xf32>
      %67 = math.log1p %66 : vector<8x128xf32>
      %68 = arith.addf %62, %67 : vector<8x128xf32>
      %69 = arith.mulf %68, %52 : vector<8x128xf32>
      %cst_31 = arith.constant dense<0.000000e+00> : vector<8xf32>
      %70 = vector.multi_reduction <add>, %69, %cst_31 [1] : vector<8x128xf32> to vector<8xf32>
      %71 = vector.shape_cast %70 : vector<8xf32> to vector<8x1xf32>
      %cst_32 = arith.constant dense<0.000000e+00> : vector<1xf32>
      %72 = vector.multi_reduction <add>, %71, %cst_32 [0] : vector<8x1xf32> to vector<1xf32>
      %73 = vector.shape_cast %72 : vector<1xf32> to vector<1x1xf32>
      %74 = arith.addf %60, %73 : vector<1x1xf32>
      %c0_33 = arith.constant 0 : index
      %c0_34 = arith.constant 0 : index
      %75 = vector.load %arg11[%c0_33, %c0_34] : memref<1x1xf32, #tpu.memory_space<vmem>>, vector<1x1xf32>
      tpu.vector_store %arg11[%c0_33, %c0_34], %74 {strides = array<i32>} : memref<1x1xf32, #tpu.memory_space<vmem>>, vector<1x1xf32>,
    } else {
    }
    %c0_i32_16 = arith.constant 0 : i32
    %37 = arith.cmpi eq, %arg1, %c0_i32_16 : i32
    %38 = arith.andi %4, %37 : i1
    %39 = arith.extui %38 : i1 to i32
    %c0_i32_17 = arith.constant 0 : i32
    %40 = arith.cmpi ne, %39, %c0_i32_17 : i32
    scf.if %40 {
      %c0_18 = arith.constant 0 : index
      %c0_19 = arith.constant 0 : index
      %41 = vector.load %arg9[%c0_18, %c0_19] : memref<1x1xi32, #tpu.memory_space<vmem>>, vector<1x1xi32>
      %c0_i32_20 = arith.constant 0 : i32
      %42 = vector.broadcast %c0_i32_20 : i32 to vector<1x1xi32>
      %43 = arith.cmpi sge, %41, %42 : vector<1x1xi32>
      %c2147483647_i32 = arith.constant 2147483647 : i32
      %44 = vector.broadcast %c2147483647_i32 : i32 to vector<1x1xi32>
      %45 = arith.xori %41, %44 : vector<1x1xi32>
      %46 = arith.select %43, %41, %45 : vector<1x1xi1>, vector<1x1xi32>
      %47 = tpu.bitcast %46 : vector<1x1xi32> -> vector<1x1xf32>
      %c0_21 = arith.constant 0 : index
      %c0_22 = arith.constant 0 : index
      %48 = vector.load %arg8[%c0_21, %c0_22] : memref<1x1xf32, #tpu.memory_space<vmem>>, vector<1x1xf32>
      %cst_23 = arith.constant 0.000000e+00 : f32
      %49 = vector.broadcast %cst_23 : f32 to vector<1x1xf32>
      %50 = arith.cmpf ogt, %48, %49 : vector<1x1xf32>
      %c0_24 = arith.constant 0 : index
      %c0_25 = arith.constant 0 : index
      %51 = vector.load %arg11[%c0_24, %c0_25] : memref<1x1xf32, #tpu.memory_space<vmem>>, vector<1x1xf32>
      %c0_26 = arith.constant 0 : index
      %c0_27 = arith.constant 0 : index
      %52 = vector.load %arg10[%c0_26, %c0_27] : memref<1x1xf32, #tpu.memory_space<vmem>>, vector<1x1xf32>
      %53 = arith.subf %48, %52 : vector<1x1xf32>
      %cst_28 = arith.constant 0.000000e+00 : f32
      %54 = vector.broadcast %cst_28 : f32 to vector<1x1xf32>
      %55 = arith.maximumf %47, %54 : vector<1x1xf32>
      %56 = math.absf %47 : vector<1x1xf32>
      %cst_29 = arith.constant 0.000000e+00 : f32
      %57 = vector.broadcast %cst_29 : f32 to vector<1x1xf32>
      %58 = arith.subf %57, %56 : vector<1x1xf32>
      %59 = math.exp %58 : vector<1x1xf32>
      %60 = math.log1p %59 : vector<1x1xf32>
      %61 = arith.addf %55, %60 : vector<1x1xf32>
      %62 = arith.mulf %53, %61 : vector<1x1xf32>
      %63 = arith.addf %51, %62 : vector<1x1xf32>
      %cst_30 = arith.constant 0.000000e+00 : f32
      %64 = vector.broadcast %cst_30 : f32 to vector<1x1xf32>
      %65 = arith.select %50, %63, %64 : vector<1x1xi1>, vector<1x1xf32>
      %c0_31 = arith.constant 0 : index
      %c0_32 = arith.constant 0 : index
      %66 = vector.load %arg5[%c0_31, %c0_32] : memref<1x1xf32, #tpu.memory_space<vmem>>, vector<1x1xf32>
      %67 = arith.addf %66, %48 : vector<1x1xf32>
      %c0_33 = arith.constant 0 : index
      %c0_34 = arith.constant 0 : index
      %68 = vector.load %arg7[%c0_33, %c0_34] : memref<1x1xf32, #tpu.memory_space<vmem>>, vector<1x1xf32>
      %69 = arith.addf %68, %65 : vector<1x1xf32>
      %cst_35 = arith.constant 0.000000e+00 : f32
      %70 = vector.broadcast %cst_35 : f32 to vector<1x1xf32>
      %71 = arith.cmpf ogt, %67, %70 : vector<1x1xf32>
      %72 = arith.divf %69, %67 : vector<1x1xf32>
      %cst_36 = arith.constant 0.000000e+00 : f32
      %73 = vector.broadcast %cst_36 : f32 to vector<1x1xf32>
      %74 = arith.select %71, %72, %73 : vector<1x1xi1>, vector<1x1xf32>
      %c0_37 = arith.constant 0 : index
      %c0_38 = arith.constant 0 : index
      %75 = vector.load %arg4[%c0_37, %c0_38] : memref<1x1xf32, #tpu.memory_space<vmem>>, vector<1x1xf32>
      tpu.vector_store %arg4[%c0_37, %c0_38], %74 {strides = array<i32>} : memref<1x1xf32, #tpu.memory_space<vmem>>, vector<1x1xf32>,
    } else {
    }
    return
  }
  func.func @transform_0(%arg0: i32, %arg1: i32) -> (i32, i32) {
    %c0_i32 = arith.constant 0 : i32
    %c0_i32_0 = arith.constant 0 : i32
    return %arg1, %c0_i32 : i32, i32
  }
  func.func @transform_1(%arg0: i32, %arg1: i32) -> (i32, i32) {
    %c0_i32 = arith.constant 0 : i32
    %c0_i32_0 = arith.constant 0 : i32
    return %arg1, %c0_i32 : i32, i32
  }
  func.func @transform_2(%arg0: i32, %arg1: i32) -> (i32, i32) {
    %c0_i32 = arith.constant 0 : i32
    %c0_i32_0 = arith.constant 0 : i32
    %c0_i32_1 = arith.constant 0 : i32
    return %c0_i32, %c0_i32_0 : i32, i32
  }
}

</mosaic_0001>

<bundles_post_ra>
// kernel: tpu_custom_call.1
= control target key start
LH: loop header
LB: loop body
LE: loop exit
PB: predicated region body
PF: predicated region fallthrough
CT: control target
= control target key end

     0   :  { %7 = vsyncpa [#allocation10], 0  ;;  %s874_s0 = inlined_call_operand.hbm [shape: f32[8,128], index: 0, kind: input, shape index: {}]   ;;  %s875_s1 = inlined_call_operand.hbm [shape: f32[8,128], index: 1, kind: input, shape index: {}]   ;;  %s876_s2 = inlined_call_operand.hbm [shape: f32[1,1], index: 2, kind: output, shape index: {}]  }
   0x1   :  { %8 = vsyncpa [#allocation13], 0 }
   0x2   :  { %9 = vsyncpa [#allocation11], 0  ;;  %s762_s9 = smov 0   ;;  %s764_s10 = smov 0  }
   0x3   :  { %s766_s11 = smov 0  }
   0x4 LB: > { %s505_s12 = sadd.s32 4294967295, %s730_s11   ;;  %s27_s13 = sadd.s32 1, %s726_s10  ;;  %s730_s11 = sphi %s766_s11, %s15_s11   ;;  %s726_s10 = sphi %s764_s10, %s881_s10   ;;  %s722_s9 = sphi %s762_s9, %s880_s9  }
   0x5   : > { %p29_p0 = scmp.ge.s32.totalorder %s27_s13, 34  ;;  %p506_p1 = scmp.ge.s32.totalorder %s730_s11, 1 }
   0x6   : > { %p105_p2 = scmp.lt.s32.totalorder %s730_s11, 35  ;;  %p789_p4 = scmp.eq.s32.totalorder %s505_s12, 0 }
   0x7   : > { %s883_s13 = smov (%p29_p0, %s27_s13), 0  ;;  %s119_s18 = sshll.u32 %s874_s0, 4  ;;  %s120_s18 = int_to_ptr.hbm [resolvable:$true] %s119_s18 }
   0x8   : > { %p783_p3 = pnand %p506_p1, %p105_p2  ;;  %s732_s19 = smov [#allocation9]  }
   0x9   : > { %s121_s20 = sshll.u32 %s732_s19, 4  ;;  %s133_s23 = sshll.u32 %s875_s1, 4  ;;  %s122_s20 = int_to_ptr.vmem [resolvable:$true] %s121_s20  ;;  %s134_s23 = int_to_ptr.hbm [resolvable:$true] %s133_s23 }
   0xa   : > { %p539_p5 = pneg %p783_p3  ;;  %s733_s24 = smov [#allocation12]  }
   0xb   : > { %s135_s25 = sshll.u32 %s733_s24, 4  ;;  %148 = sbr.rel (%p783_p3) target bundleno = 802 (0x322), region = 28  ;;  %s136_s25 = int_to_ptr.vmem [resolvable:$true] %s135_s25 }
   0xc   : > { %p540_p6 = pnand %p789_p4, %p539_p5 }
   0xe   : > { %542 = dma.hbm_to_vmem [thread:$0]  (!%p540_p6), %s120_s18, 128, %s122_s20, [#allocation10]  }
   0xf   : > { %545 = dma.hbm_to_vmem [thread:$0]  (!%p540_p6), %s134_s23, 128, %s136_s25, [#allocation13]  }
  0x10   : > { %709 = dma.done.wait (%p789_p4), [#allocation10], 128  }
  0x11   : > { %711 = vsyncadd (%p789_p4), [#allocation10], 4294967168 }
  0x12   : > { %713 = dma.done.wait (%p789_p4), [#allocation13], 128  }
  0x13   : > { %715 = vsyncadd (%p789_p4), [#allocation13], 4294967168  ;;  %p166_p7 = scmp.eq.s32.totalorder %s722_s9, 0  ;;  %p167_p8 = scmp.ge.s32.totalorder %s722_s9, 1  ;;  %v821_v0 = vld [vmem:[#allocation9] sm:$0xff]  ;;  %v173_v1 = vld [vmem:[#allocation12] sm:$0xff] }
  0x14   : > { %p168_p9 = scmp.le.s32.totalorder %s722_s9, 32  ;;  %p171_p10 = scmp.eq.s32.totalorder %s722_s9, 33  ;;  %vm174_vm0 = vcmp.eq.f32.partialorder %v173_v1, 0.0  ;;  %v734_v2 = vmov 0.0   ;;  %vm182_vm1 = vcmask (%p166_p7), 0   ;;  %v735_v4 = vmov (%p166_p7), 0.0  }
  0x15   : > { %v823_v3 = vsel %vm174_vm0, 1.0, %v734_v2  ;;  %181 = sbr.rel (!%p166_p7) target bundleno = 26 (0x1a), region = 40  ;;  %183 = vst.msk [vmem:[#allocation2] sm:$0x1] (%p166_p7), %vm182_vm1, %v735_v4 }
  0x16   : > { %p817_p11 = pnand %p168_p9, %p167_p8  ;;  %184 = vst.msk [vmem:[#allocation3] sm:$0x1] (%p166_p7), %vm182_vm1, %v735_v4 }
  0x17   : > { %185 = vst.msk [vmem:[#allocation4] sm:$0x1] (%p166_p7), %vm182_vm1, %v735_v4 }
  0x18   : > { %186 = vst.msk [vmem:[#allocation14] sm:$0x1] (%p166_p7), %vm182_vm1, %v735_v4 }
  0x1a PF: > { %p514_p12 = scmp.ne.s32.totalorder %s722_s9, 0 }
  0x1c   : > { %189 = sbr.rel (%p514_p12) target bundleno = 195 (0xc3), region = 44 }
  0x21   : > { %vm190_vm2 = vcmp.gt.f32.partialorder %v173_v1, 0.0  ;;  %v217_v5 = vand.u32 2147483647, %v821_v0  ;;  %v736_v6 = vmov 0.0   ;;  %v216_v17 = vmax.f32 %v821_v0, 0.0 }
  0x22   : > { %v515_v7 = vsel %vm190_vm2, 1.0, %v736_v6  ;;  %v231_v19 = vmul.f32 %v173_v1, %v821_v0  ;;  %v193_v32 = vld [vmem:[#allocation2] sm:$0x1]  ;;  %vm203_vm4 = vcmask 0   ;;  %v205_v39 = vld [vmem:[#allocation3] sm:$0x1] }
  0x23   : > { %194 = vadd.xlane.f32.xlu0 %v515_v7  ;;  %v218_v8 = vsub.f32 0.0, %v217_v5  ;;  %v233_v48 = vld [vmem:[#allocation4] sm:$0x1] }
  0x25   : > { %v219_v9 = vmul.f32 1.442695, %v218_v8 }
  0x27   : > { %591 = vpow2.f32 %v219_v9 }
  0x2b   : > { %206 = vadd.xlane.f32.xlu0 %v823_v3 }
  0x2d   : > { %v592_v10 = vpop.eup %591 }
  0x2e   : > { %v221_v11 = vadd.f32 1.0, %v592_v10  ;;  %v224_v12 = vmul.f32 -0.5, %v592_v10  ;;  %v227_v14 = vand.u32 2147483647, %v592_v10 }
  0x30   : > { %593 = vlog2.f32 %v221_v11  ;;  %v225_v13 = vadd.f32 1.0, %v224_v12  ;;  %vm228_vm3 = vcmp.lt.f32.partialorder %v227_v14, 0.0004427343 }
  0x32   : > { %v226_v15 = vmul.f32 %v592_v10, %v225_v13 }
  0x36   : > { %v594_v16 = vpop.eup %593 }
  0x37   : > { %v223_v18 = vmul.f32 0.6931472, %v594_v16 }
  0x39   : > { %v229_v20 = vsel %vm228_vm3, %v226_v15, %v223_v18 }
  0x3a   : > { %v230_v21 = vadd.f32 %v229_v20, %v216_v17 }
  0x3c   : > { %v232_v22 = vsub.f32 %v230_v21, %v231_v19 }
  0x3e   : > { %v234_v23 = vmul.f32 %v515_v7, %v232_v22 }
  0x40   : > { %235 = vadd.xlane.f32.xlu1 %v234_v23 }
  0x96   : > { %v195_v24 = vpop.xlane.xlu0 %194 }
  0x97   : > { %v196_v25 = vrot.slane %v195_v24, 4 }
  0x99   : > { %v197_v26 = vadd.f32 %v196_v25, %v195_v24 }
  0x9b   : > { %v198_v27 = vrot.slane %v197_v26, 2 }
  0x9d   : > { %v199_v28 = vadd.f32 %v198_v27, %v197_v26 }
  0x9e   : > { %v207_v29 = vpop.xlane.xlu0 %206 }
  0x9f   : > { %v200_v30 = vrot.slane %v199_v28, 1  ;;  %v208_v31 = vrot.slane %v207_v29, 4 }
  0xa1   : > { %v201_v33 = vadd.f32 %v200_v30, %v199_v28  ;;  %v209_v34 = vadd.f32 %v208_v31, %v207_v29 }
  0xa3   : > { %v202_v35 = vadd.f32 %v201_v33, %v193_v32  ;;  %v210_v36 = vrot.slane %v209_v34, 2 }
  0xa5   : > { %204 = vst.msk [vmem:[#allocation2] sm:$0x1] %vm203_vm4, %v202_v35  ;;  %v211_v37 = vadd.f32 %v210_v36, %v209_v34 }
  0xa7   : > { %v212_v38 = vrot.slane %v211_v37, 1 }
  0xa9   : > { %v213_v40 = vadd.f32 %v212_v38, %v211_v37 }
  0xab   : > { %v214_v41 = vadd.f32 %v213_v40, %v205_v39 }
  0xad   : > { %215 = vst.msk [vmem:[#allocation3] sm:$0x1] %vm203_vm4, %v214_v41 }
  0xb3   : > { %v236_v42 = vpop.xlane.xlu1 %235 }
  0xb4   : > { %v237_v43 = vrot.slane %v236_v42, 4 }
  0xb6   : > { %v238_v44 = vadd.f32 %v237_v43, %v236_v42 }
  0xb8   : > { %v239_v45 = vrot.slane %v238_v44, 2 }
  0xba   : > { %v240_v46 = vadd.f32 %v239_v45, %v238_v44 }
  0xbc   : > { %v241_v47 = vrot.slane %v240_v46, 1 }
  0xbe   : > { %v242_v49 = vadd.f32 %v241_v47, %v240_v46 }
  0xc0   : > { %v243_v50 = vadd.f32 %v242_v49, %v233_v48 }
  0xc2   : > { %244 = vst.msk [vmem:[#allocation4] sm:$0x1] %vm203_vm4, %v243_v50 }
  0xc3 PF: > { %246 = sbr.rel (!%p166_p7) target bundleno = 203 (0xcb), region = 48  ;;  %v247_v51 = vld [vmem:[#allocation2] sm:$0x1] (%p166_p7)  ;;  %vm252_vm5 = vcmask (%p166_p7), 0   ;;  %v737_v53 = vmov (%p166_p7), 2147483648  }
  0xc4   : > { %v248_v52 = vmul.f32 (%p166_p7), 3.0, %v247_v51  ;;  %254 = vst.msk [vmem:[#allocation6] sm:$0x1] (%p166_p7), %vm252_vm5, %v737_v53  ;;  %v250_v54 = vld [vmem:[#allocation3] sm:$0x1] (%p166_p7) }
  0xc6   : > { %v249_v55 = vfloor.f32 (%p166_p7), %v248_v52 }
  0xc8   : > { %v251_v56 = vmin.f32 %v249_v55, %v250_v54 }
  0xca   : > { %253 = vst.msk [vmem:[#allocation5] sm:$0x1] %vm252_vm5, %v251_v56 }
  0xcb PF: > { %258 = sbr.rel (%p817_p11) target bundleno = 210 (0xd2), region = 52 }
  0xd0   : > { %vm259_vm6 = vcmask 0   ;;  %v738_v57 = vmov 0.0  }
  0xd1   : > { %260 = vst.msk [vmem:[#allocation7] sm:$0x1] %vm259_vm6, %v738_v57 }
  0xd2 PF: > { %262 = sbr.rel (%p817_p11) target bundleno = 474 (0x1da), region = 56  ;;  %s263_s27 = ssub.s32 (!%p817_p11), 32, %s722_s9 }
  0xd3   : > { %p264_p13 = scmp.lt.s32.totalorder (!%p817_p11), %s263_s27, 30  ;;  %p267_p0 = scmp.eq.s32.totalorder (!%p817_p11), %s263_s27, 31 }
  0xd4   : > { %s740_s29 = smov (!%p817_p11), 1  }
  0xd7   : > { %v739_v58 = vmov 0   ;;  %s885_s27 = smov (!%p264_p13, %s263_s27), 30  ;;  %v268_v59 = vld [vmem:[#allocation6] sm:$0x1]  ;;  %v277_v2 = vxor.u32 2147483647, %v821_v0 }
  0xd8   : > { %595 = vset.pattern.permute.xlu0 %v739_v58  ;;  %s271_s28 = scalar_select %p267_p0, 1, 0  ;;  %vm276_vm8 = vcmp.lt.s32.totalorder %v821_v0, 0  ;;  %v741_v6 = vmov 0.0   ;;  %v287_v15 = vld [vmem:[#allocation7] sm:$0x1] }
  0xd9   : > { %s266_s30 = sshll.u32 %s740_s29, %s885_s27  ;;  %v278_v4 = vsel %vm276_vm8, %v277_v2, %v821_v0  ;;  %vm297_vm10 = vcmask 0  }
  0xda   : > { %v269_v60 = vstv %s266_s30  ;;  %v272_v61 = vstv %s271_s28 }
  0xdb   : > { %v270_v62 = vadd.s32 %v269_v60, %v268_v59  ;;  %vm273_vm7 = vcmp.eq.s32.totalorder %v272_v61, 1 }
  0xdd   : > { %v274_v63 = vsel %vm273_vm7, 0, %v270_v62 }
  0xde   : > { %v279_v1 = vperm.slane %v274_v63, 0 }
  0xe0   : > { %281 = vperm.xlu0 %595, %v279_v1  }
 0x152   : > { %v282_v5 = vpop.permute.xlu0 %281 }
 0x153   : > { %vm283_vm9 = vcmp.ge.s32.totalorder %v278_v4, %v282_v5 }
 0x154   : > { %v517_v7 = vsel %vm283_vm9, 1.0, %v741_v6 }
 0x155   : > { %v286_v8 = vmul.f32 %v517_v7, %v823_v3 }
 0x157   : > { %288 = vadd.xlane.f32.xlu0 %v286_v8 }
 0x1ca   : > { %v289_v9 = vpop.xlane.xlu0 %288 }
 0x1cb   : > { %v290_v10 = vrot.slane %v289_v9, 4 }
 0x1cd   : > { %v291_v11 = vadd.f32 %v290_v10, %v289_v9 }
 0x1cf   : > { %v292_v12 = vrot.slane %v291_v11, 2 }
 0x1d1   : > { %v293_v13 = vadd.f32 %v292_v12, %v291_v11 }
 0x1d3   : > { %v294_v14 = vrot.slane %v293_v13, 1 }
 0x1d5   : > { %v295_v16 = vadd.f32 %v294_v14, %v293_v13 }
 0x1d7   : > { %v296_v17 = vadd.f32 %v295_v16, %v287_v15 }
 0x1d9   : > { %298 = vst.msk [vmem:[#allocation7] sm:$0x1] %vm297_vm10, %v296_v17 }
 0x1da PF: > { %300 = sbr.rel (%p817_p11) target bundleno = 488 (0x1e8), region = 60  ;;  %s301_s3 = ssub.s32 (!%p817_p11), 32, %s722_s9 }
 0x1db   : > { %p302_p1 = scmp.lt.s32.totalorder (!%p817_p11), %s301_s3, 30  ;;  %p305_p2 = scmp.eq.s32.totalorder (!%p817_p11), %s301_s3, 31 }
 0x1dc   : > { %s742_s5 = smov (!%p817_p11), 1  }
 0x1df   : > { %s887_s3 = smov (!%p302_p1, %s301_s3), 30  ;;  %v306_v18 = vld [vmem:[#allocation6] sm:$0x1]  ;;  %v314_v20 = vld [vmem:[#allocation5] sm:$0x1]  ;;  %vm317_vm13 = vcmask 0  }
 0x1e0   : > { %s309_s4 = scalar_select %p305_p2, 1, 0  ;;  %v313_v19 = vld [vmem:[#allocation7] sm:$0x1] }
 0x1e1   : > { %s304_s6 = sshll.u32 %s742_s5, %s887_s3  ;;  %vm315_vm12 = vcmp.ge.f32.partialorder %v313_v19, %v314_v20 }
 0x1e2   : > { %v307_v21 = vstv %s304_s6  ;;  %v310_v22 = vstv %s309_s4 }
 0x1e3   : > { %v308_v23 = vadd.s32 %v307_v21, %v306_v18  ;;  %vm311_vm11 = vcmp.eq.s32.totalorder %v310_v22, 1 }
 0x1e5   : > { %v312_v24 = vsel %vm311_vm11, 0, %v308_v23 }
 0x1e6   : > { %v316_v25 = vsel %vm315_vm12, %v312_v24, %v306_v18 }
 0x1e7   : > { %318 = vst.msk [vmem:[#allocation6] sm:$0x1] %vm317_vm13, %v316_v25 }
 0x1e8 PF: > { %322 = sbr.rel (!%p171_p10) target bundleno = 493 (0x1ed), region = 64  ;;  %vm323_vm14 = vcmask (%p171_p10), 0   ;;  %v743_v26 = vmov (%p171_p10), 0.0  }
 0x1e9   : > { %324 = vst.msk [vmem:[#allocation7] sm:$0x1] (%p171_p10), %vm323_vm14, %v743_v26 }
 0x1ea   : > { %325 = vst.msk [vmem:[#allocation8] sm:$0x1] (%p171_p10), %vm323_vm14, %v743_v26 }
 0x1ed PF: > { %p519_p3 = scmp.ne.s32.totalorder %s722_s9, 33 }
 0x1ef   : > { %328 = sbr.rel (%p519_p3) target bundleno = 754 (0x2f2), region = 68 }
 0x1f4   : > { %v597_v27 = vld [vmem:[#allocation6] ss:$0 sm:$0xff]  ;;  %v744_v28 = vmov 0   ;;  %v356_v29 = vand.u32 2147483647, %v821_v0  ;;  %vm330_vm15 = vcmp.lt.s32.totalorder %v821_v0, 0 }
 0x1f5   : > { %596 = vset.pattern.permute.xlu0 %v744_v28  ;;  %v331_v38 = vxor.u32 2147483647, %v821_v0  ;;  %v355_v41 = vmax.f32 %v821_v0, 0.0  ;;  %v745_v46 = vmov 0.0   ;;  %v342_v60 = vld [vmem:[#allocation7] sm:$0x1] }
 0x1f6   : > { %336 = vperm.xlu0 %596, %v597_v27   ;;  %v357_v30 = vsub.f32 0.0, %v356_v29  ;;  %vm352_vm2 = vcmask 0   ;;  %v354_v63 = vld [vmem:[#allocation8] sm:$0x1] }
 0x1f7   : > { %v332_v42 = vsel %vm330_vm15, %v331_v38, %v821_v0 }
 0x1f8   : > { %v358_v31 = vmul.f32 1.442695, %v357_v30 }
 0x1fa   : > { %598 = vpow2.f32 %v358_v31 }
 0x200   : > { %v599_v32 = vpop.eup %598 }
 0x201   : > { %v360_v33 = vadd.f32 1.0, %v599_v32  ;;  %v363_v34 = vmul.f32 -0.5, %v599_v32  ;;  %v366_v37 = vand.u32 2147483647, %v599_v32 }
 0x203   : > { %600 = vlog2.f32 %v360_v33  ;;  %v364_v35 = vadd.f32 1.0, %v363_v34  ;;  %vm367_vm0 = vcmp.lt.f32.partialorder %v366_v37, 0.0004427343 }
 0x205   : > { %v365_v40 = vmul.f32 %v599_v32, %v364_v35 }
 0x209   : > { %v601_v36 = vpop.eup %600 }
 0x20a   : > { %v362_v39 = vmul.f32 0.6931472, %v601_v36 }
 0x20c   : > { %v368_v43 = vsel %vm367_vm0, %v365_v40, %v362_v39 }
 0x20d   : > { %v369_v45 = vadd.f32 %v368_v43, %v355_v41 }
 0x268   : > { %v337_v44 = vpop.permute.xlu0 %336 }
 0x269   : > { %vm338_vm1 = vcmp.gt.s32.totalorder %v332_v42, %v337_v44 }
 0x26a   : > { %v520_v47 = vsel %vm338_vm1, 1.0, %v745_v46 }
 0x26b   : > { %v341_v48 = vmul.f32 %v520_v47, %v823_v3 }
 0x26d   : > { %343 = vadd.xlane.f32.xlu0 %v341_v48  ;;  %v370_v49 = vmul.f32 %v369_v45, %v341_v48 }
 0x26f   : > { %371 = vadd.xlane.f32.xlu1 %v370_v49 }
 0x2e0   : > { %v344_v50 = vpop.xlane.xlu0 %343 }
 0x2e1   : > { %v345_v51 = vrot.slane %v344_v50, 4 }
 0x2e2   : > { %v372_v52 = vpop.xlane.xlu1 %371 }
 0x2e3   : > { %v346_v53 = vadd.f32 %v345_v51, %v344_v50  ;;  %v373_v54 = vrot.slane %v372_v52, 4 }
 0x2e5   : > { %v347_v55 = vrot.slane %v346_v53, 2  ;;  %v374_v56 = vadd.f32 %v373_v54, %v372_v52 }
 0x2e7   : > { %v348_v57 = vadd.f32 %v347_v55, %v346_v53  ;;  %v375_v0 = vrot.slane %v374_v56, 2 }
 0x2e9   : > { %v349_v58 = vrot.slane %v348_v57, 1  ;;  %v376_v59 = vadd.f32 %v375_v0, %v374_v56 }
 0x2eb   : > { %v350_v61 = vadd.f32 %v349_v58, %v348_v57  ;;  %v377_v62 = vrot.slane %v376_v59, 1 }
 0x2ed   : > { %v351_v3 = vadd.f32 %v350_v61, %v342_v60  ;;  %v378_v1 = vadd.f32 %v377_v62, %v376_v59 }
 0x2ef   : > { %353 = vst.msk [vmem:[#allocation7] sm:$0x1] %vm352_vm2, %v351_v3  ;;  %v379_v2 = vadd.f32 %v378_v1, %v354_v63 }
 0x2f1   : > { %380 = vst.msk [vmem:[#allocation8] sm:$0x1] %vm352_vm2, %v379_v2 }
 0x2f2 PF: > { %382 = sbr.rel (!%p171_p10) target bundleno = 796 (0x31c), region = 72  ;;  %v383_v4 = vld [vmem:[#allocation6] sm:$0x1] (%p171_p10)  ;;  %v388_v5 = vld [vmem:[#allocation5] sm:$0x1] (%p171_p10)  ;;  %vm432_vm11 = vcmask (%p171_p10), 0  }
 0x2f3   : > { %vm384_vm3 = vcmp.ge.s32.totalorder (%p171_p10), %v383_v4, 0  ;;  %v385_v6 = vxor.u32 (%p171_p10), 2147483647, %v383_v4  ;;  %v411_v7 = vld [vmem:[#allocation2] sm:$0x1] (%p171_p10)  ;;  %vm389_vm8 = vcmp.gt.f32.partialorder (%p171_p10), %v388_v5, 0.0 }
 0x2f4   : > { %v412_v9 = vadd.f32 (%p171_p10), %v411_v7, %v388_v5  ;;  %v413_v38 = vld [vmem:[#allocation4] sm:$0x1] (%p171_p10) }
 0x2f5   : > { %v386_v8 = vsel (%p171_p10), %vm384_vm3, %v383_v4, %v385_v6 }
 0x2f6   : > { %v394_v10 = vand.u32 (%p171_p10), 2147483647, %v386_v8  ;;  %602 = vrcp.f32 (%p171_p10), %v412_v9  ;;  %v391_v21 = vld [vmem:[#allocation7] sm:$0x1] (%p171_p10)  ;;  %v393_v25 = vmax.f32 (%p171_p10), %v386_v8, 0.0  ;;  %vm421_vm5 = vweird.f32 (%p171_p10), %v412_v9 }
 0x2f7   : > { %v392_v27 = vsub.f32 %v388_v5, %v391_v21  ;;  %v427_v28 = vand.u32 2147483648, %v412_v9  ;;  %v425_v31 = vand.u32 2147483647, %v412_v9  ;;  %vm415_vm10 = vcmp.gt.f32.partialorder %v412_v9, 0.0 }
 0x2f8   : > { %v395_v11 = vsub.f32 0.0, %v394_v10  ;;  %v390_v33 = vld [vmem:[#allocation8] sm:$0x1] }
 0x2f9   : > { %v428_v35 = vor.u32 1.1754944e-38, %v427_v28  ;;  %vm426_vm9 = vcmp.eq.f32.partialorder %v425_v31, 8.507059e+37 }
 0x2fa   : > { %v396_v12 = vmul.f32 1.442695, %v395_v11 }
 0x2fc   : > { %604 = vpow2.f32 %v396_v12  ;;  %v603_v13 = vpop.eup %602 }
 0x2fd   : > { %v417_v15 = vmul.f32 %v603_v13, %v412_v9  ;;  %vm422_vm6 = vweird.f32 %v603_v13 }
 0x2fe   : > { %vm423_vm7 = vmor %vm421_vm5, %vm422_vm6 }
 0x2ff   : > { %v418_v19 = vsub.f32 1.0, %v417_v15 }
 0x301   : > { %v419_v23 = vmul.f32 %v603_v13, %v418_v19 }
 0x302   : > { %v605_v14 = vpop.eup %604 }
 0x303   : > { %v398_v16 = vadd.f32 1.0, %v605_v14  ;;  %v401_v17 = vmul.f32 -0.5, %v605_v14  ;;  %v404_v20 = vand.u32 2147483647, %v605_v14  ;;  %v420_v30 = vadd.f32 %v603_v13, %v419_v23 }
 0x305   : > { %606 = vlog2.f32 %v398_v16  ;;  %v402_v18 = vadd.f32 1.0, %v401_v17  ;;  %vm405_vm4 = vcmp.lt.f32.partialorder %v404_v20, 0.0004427343  ;;  %v424_v36 = vsel %vm423_vm7, %v603_v13, %v420_v30 }
 0x306   : > { %v429_v40 = vsel %vm426_vm9, %v428_v35, %v424_v36 }
 0x307   : > { %v403_v22 = vmul.f32 %v605_v14, %v402_v18 }
 0x30b   : > { %v607_v24 = vpop.eup %606 }
 0x30c   : > { %v400_v26 = vmul.f32 0.6931472, %v607_v24 }
 0x30e   : > { %v406_v29 = vsel %vm405_vm4, %v403_v22, %v400_v26 }
 0x30f   : > { %v407_v32 = vadd.f32 %v406_v29, %v393_v25 }
 0x311   : > { %v408_v34 = vmul.f32 %v407_v32, %v392_v27 }
 0x313   : > { %v409_v37 = vadd.f32 %v408_v34, %v390_v33 }
 0x315   : > { %v410_v39 = vsel %vm389_vm8, %v409_v37, 0.0 }
 0x316   : > { %v414_v41 = vadd.f32 %v413_v38, %v410_v39 }
 0x318   : > { %v430_v42 = vmul.f32 %v429_v40, %v414_v41 }
 0x31a   : > { %v431_v43 = vsel %vm415_vm10, %v430_v42, 0.0 }
 0x31b   : > { %433 = vst.msk [vmem:[#allocation14] sm:$0x1] %vm432_vm11, %v431_v43 }
 0x31c PF: > { %p550_p4 = scmp.eq.s32.totalorder %s505_s12, 33  ;;  %s442_s9 = sshll.u32 %s876_s2, 4  ;;  %s443_s9 = int_to_ptr.hbm [resolvable:$true] %s442_s9 }
 0x31d   : > { %s746_s14 = smov [#allocation14]  }
 0x31e   : > { %s440_s15 = sshll.u32 %s746_s14, 4  ;;  %s441_s15 = int_to_ptr.vmem [resolvable:$true] %s440_s15 }
 0x31f   : > { %536 = dma.vmem_to_hbm [thread:$0]  (%p550_p4), %s441_s15, 16, %s443_s9, [#allocation11]  }
 0x320   : > { %717 = dma.done.wait (%p550_p4), [#allocation11], 16  }
 0x321   : > { %719 = vsyncadd (%p550_p4), [#allocation11], 4294967280 }
 0x322 PF: > { %s15_s11 = sadd.s32 1, %s730_s11   ;;  %s880_s9 = smov %s726_s10 }
 0x323   : > { %p12_p5 = scmp.ge.s32.totalorder %s15_s11, 36   ;;  %s881_s10 = smov %s883_s13 }
 0x325   :  { %14 = sbr.rel (!%p12_p5) target bundleno = 4 (0x4), region = 99 }
 0x32a   :  { %456 = vsyncpa [#allocation10], 1 }
 0x32b   :  { %458 = vsyncpa [#allocation10 + $0x1], 1 }
 0x32c   :  { %459 = vsyncpa [#allocation13], 1 }
 0x32d   :  { %460 = vsyncpa [#allocation11], 1 }
 0x32e   :  { %462 = vsyncpa [#allocation11 + $0x1], 1 }

</bundles_post_ra>
